<compile_context>
chip_gen: v5e
topology: v5e:2x2
jax: 0.10.0
libtpu: 0.0.40
codegen_flags: <defaults>
</compile_context>

<pallas_src>
import math
import functools

import jax
import jax.numpy as jnp
from jax import lax
from jax.experimental import pallas as pl
from jax.experimental.pallas import tpu as pltpu

EPS = 1e-12
VMEM_LIMIT_BYTES = 48 * 1024 * 1024  # fits under v7x's 64 MiB with headroom

# Packed per-layer vector rows (D-wide pack)
_VD_GATE_ATTN, _VD_BD, _VD_G1, _VD_BE1, _VD_GATE_IB1, _VD_B2F, _VD_G2, _VD_BE2, _VD_GATE_OUT = range(9)
# Packed per-layer vector rows (Hid-wide pack)
_VH_B1F, _VH_GATE_IB2 = range(2)


# --------------------------------------------------------------------------
# Shared math helpers
# --------------------------------------------------------------------------
def _layernorm(x, g, b):
    # mean over last dim, biased variance, (x-mean)*rsqrt(var+eps)*g + b
    mean = jnp.mean(x, axis=-1, keepdims=True)
    var = jnp.mean((x - mean) ** 2, axis=-1, keepdims=True)
    return g * ((x - mean) * lax.rsqrt(var + EPS)) + b


def _ref_layernorm(x, g, b):
    # literal PyTorch form (divide by sqrt) for the independent reference
    mean = jnp.mean(x, axis=-1, keepdims=True)
    var = jnp.mean((x - mean) ** 2, axis=-1, keepdims=True)
    return g * ((x - mean) / jnp.sqrt(var + EPS)) + b


def _gelu(x):
    # HuggingFace erf-based gelu: x * 0.5 * (1 + erf(x / sqrt(2)))
    return x * 0.5 * (1.0 + lax.erf(x / math.sqrt(2.0)))


def _seq_tile(S, cap=256):
    """Largest query-tile: full S if small, else biggest multiple-of-8 divisor <= cap."""
    if S <= cap:
        return S
    best = 0
    for t in range(8, cap + 1, 8):
        if S % t == 0:
            best = t
    return best if best > 0 else S


# --------------------------------------------------------------------------
# Kernel 1: fused QKV projection (x @ [Wq|Wk|Wv] + [bq|bk|bv]), bf16 in/out
#           grid = (B, S // TQ); scale 1/sqrt(Dh) already folded into Wq/bq
# --------------------------------------------------------------------------
def qkv_proj_kernel(x_ref, wqkv_ref, bqkv_ref, q_ref, k_ref, v_ref):
    x = x_ref[0]                                              # (TQ, D) bf16
    acc = jnp.dot(x, wqkv_ref[...],
                  preferred_element_type=jnp.float32) + bqkv_ref[...]  # (TQ, 3D) f32
    D = q_ref.shape[-1]
    q_ref[0] = acc[:, :D].astype(q_ref.dtype)
    k_ref[0] = acc[:, D:2 * D].astype(k_ref.dtype)
    v_ref[0] = acc[:, 2 * D:].astype(v_ref.dtype)


# --------------------------------------------------------------------------
# Kernel 2: attention (per q-tile, full K/V) + dense + LN1 + FFN + LN2 + gates
#           grid = (B, S // TQ)
# --------------------------------------------------------------------------
def encoder_body_kernel(x_ref, q_ref, k_ref, v_ref, mask_ref,
                        wd_ref, w1_ref, w2_ref, vd_ref, vh_ref,
                        out_ref, *, n_heads):
    f32 = jnp.float32
    bf16 = jnp.bfloat16

    x = x_ref[0].astype(f32)                                  # (TQ, D) residual
    q = q_ref[0]                                              # (TQ, D) bf16 (pre-scaled)
    k = k_ref[0]                                              # (S,  D) bf16
    v = v_ref[0]                                              # (S,  D) bf16
    neg = 10000.0 * (1.0 - mask_ref[0])                       # (1, S) f32

    TQ, D = x.shape
    Dh = D // n_heads

    vd = vd_ref[...]                                          # (9, D)  f32
    vh = vh_ref[...]                                          # (2, Hid) f32
    wd = wd_ref[...]                                          # (D, D)  bf16
    gate_attn = vd[_VD_GATE_ATTN:_VD_GATE_ATTN + 1, :]        # (1, D)

    # ---- Multi-head self-attention, dense projection fused per head --------
    attn = jnp.zeros((TQ, D), f32)
    for h in range(n_heads):                                  # static unrolled
        sl = slice(h * Dh, (h + 1) * Dh)
        # scores: contract last dims of q-slice and k-slice (no explicit .T)
        s = lax.dot_general(q[:, sl], k[:, sl], (((1,), (1,)), ((), ())),
                            preferred_element_type=f32)       # (TQ, S)
        s = s - neg
        s = s - jnp.max(s, axis=-1, keepdims=True)            # stable softmax
        p = jnp.exp(s)
        p = p * pl.reciprocal(jnp.sum(p, axis=-1, keepdims=True), approx=True)
        ctx = jnp.dot(p.astype(bf16), v[:, sl],
                      preferred_element_type=f32)             # (TQ, Dh)
        ctx = ctx * gate_attn[:, sl]                          # SlimLayer ib_attention
        # fold the dense projection: accumulate ctx_h @ Wd[h*Dh:(h+1)*Dh, :]
        attn = attn + jnp.dot(ctx.astype(bf16), wd[sl, :],
                              preferred_element_type=f32)     # (TQ, D)

    h1 = attn + vd[_VD_BD:_VD_BD + 1, :]
    x1 = _layernorm(x + h1, vd[_VD_G1:_VD_G1 + 1, :], vd[_VD_BE1:_VD_BE1 + 1, :])

    # ---- FeedForward: fc2(ib2(gelu(fc1(ib1(x1))))) + residual + LN2 --------
    y = x1 * vd[_VD_GATE_IB1:_VD_GATE_IB1 + 1, :]
    y = jnp.dot(y.astype(bf16), w1_ref[...],
                preferred_element_type=f32) + vh[_VH_B1F:_VH_B1F + 1, :]
    y = _gelu(y)
    y = y * vh[_VH_GATE_IB2:_VH_GATE_IB2 + 1, :]
    y = jnp.dot(y.astype(bf16), w2_ref[...],
                preferred_element_type=f32) + vd[_VD_B2F:_VD_B2F + 1, :]
    x2 = _layernorm(x1 + y, vd[_VD_G2:_VD_G2 + 1, :], vd[_VD_BE2:_VD_BE2 + 1, :])

    out_ref[0] = (x2 * vd[_VD_GATE_OUT:_VD_GATE_OUT + 1, :]).astype(out_ref.dtype)


# --------------------------------------------------------------------------
# One encoder layer = two pallas_calls (QKV projection, then fused body)
# --------------------------------------------------------------------------
def encoder_layer(x, mask3, lp, n_heads):
    B, S, D = x.shape
    Hid = lp["w1"].shape[1]
    TQ = _seq_tile(S)
    nq = S // TQ
    cparams = pltpu.CompilerParams(
        dimension_semantics=("parallel", "parallel"),
        vmem_limit_bytes=VMEM_LIMIT_BYTES)

    q, k, v = pl.pallas_call(
        qkv_proj_kernel,
        out_shape=(jax.ShapeDtypeStruct((B, S, D), jnp.bfloat16),) * 3,
        grid=(B, nq),
        in_specs=[
            pl.BlockSpec((1, TQ, D), lambda b, s: (b, s, 0)),
            pl.BlockSpec((D, 3 * D), lambda b, s: (0, 0)),
            pl.BlockSpec((1, 3 * D), lambda b, s: (0, 0)),
        ],
        out_specs=(pl.BlockSpec((1, TQ, D), lambda b, s: (b, s, 0)),) * 3,
        compiler_params=cparams,
    )(x, lp["wqkv"], lp["bqkv"])

    kernel = functools.partial(encoder_body_kernel, n_heads=n_heads)
    return pl.pallas_call(
        kernel,
        out_shape=jax.ShapeDtypeStruct((B, S, D), jnp.bfloat16),
        grid=(B, nq),
        in_specs=[
            pl.BlockSpec((1, TQ, D), lambda b, s: (b, s, 0)),   # x residual tile
            pl.BlockSpec((1, TQ, D), lambda b, s: (b, s, 0)),   # q tile
            pl.BlockSpec((1, S, D), lambda b, s: (b, 0, 0)),    # k (full sequence)
            pl.BlockSpec((1, S, D), lambda b, s: (b, 0, 0)),    # v (full sequence)
            pl.BlockSpec((1, 1, S), lambda b, s: (b, 0, 0)),    # mask
            pl.BlockSpec((D, D), lambda b, s: (0, 0)),          # wd
            pl.BlockSpec((D, Hid), lambda b, s: (0, 0)),        # w1
            pl.BlockSpec((Hid, D), lambda b, s: (0, 0)),        # w2
            pl.BlockSpec((9, D), lambda b, s: (0, 0)),          # packed D-vectors
            pl.BlockSpec((2, Hid), lambda b, s: (0, 0)),        # packed Hid-vectors
        ],
        out_specs=pl.BlockSpec((1, TQ, D), lambda b, s: (b, s, 0)),
        compiler_params=cparams,
    )(x, q, k, v, mask3, lp["wd"], lp["w1"], lp["w2"], lp["vecs_d"], lp["vecs_h"])


# --------------------------------------------------------------------------
# Full model forward (Pallas kernels + JAX glue for embedding gathers + LN)
# --------------------------------------------------------------------------
def bottled_bert_forward(prep, token_ids, seg_ids, mask, n_heads, prune_emb):
    B, S = token_ids.shape
    tok = jnp.take(prep["tok_emb"], token_ids, axis=0)
    pos = prep["pos_emb"][:S][None, :, :]
    seg = jnp.take(prep["seg_emb"], seg_ids, axis=0)
    emb = (tok + pos + seg).astype(jnp.float32)

    x = _layernorm(emb, prep["emb_gamma"], prep["emb_beta"])
    if prune_emb:
        x = x * prep["ib_emb_gate"]                           # SlimLayer ib_emb
    x = x.astype(jnp.bfloat16)

    mask3 = mask.astype(jnp.float32)[:, None, :]              # (B, 1, S), 1.0 = keep
    for lp in prep["layers"]:
        x = encoder_layer(x, mask3, lp, n_heads)
    return x


# --------------------------------------------------------------------------
# Parameter preparation: fuse QKV, fold 1/sqrt(Dh), pack vectors, cast bf16
# --------------------------------------------------------------------------
def prepare_params(params, n_heads):
    bf16 = jnp.bfloat16
    D = params["tok_emb"].shape[1]
    Dh = D // n_heads
    scale = 1.0 / math.sqrt(Dh)

    prep = {
        "tok_emb": params["tok_emb"],
        "pos_emb": params["pos_emb"],
        "seg_emb": params["seg_emb"],
        "emb_gamma": params["emb_gamma"],
        "emb_beta": params["emb_beta"],
        "ib_emb_gate": params["ib_emb_gate"],
        "layers": [],
    }
    for p in params["layers"]:
        wqkv = jnp.concatenate([p["wq"] * scale, p["wk"], p["wv"]], axis=1).astype(bf16)
        bqkv = jnp.concatenate([p["bq"] * scale, p["bk"], p["bv"]], axis=1)  # f32 (1, 3D)
        vecs_d = jnp.concatenate([p["gate_attn"], p["bd"], p["g1"], p["be1"],
                                  p["gate_ib1"], p["b2f"], p["g2"], p["be2"],
                                  p["gate_out"]], axis=0)                    # (9, D) f32
        vecs_h = jnp.concatenate([p["b1f"], p["gate_ib2"]], axis=0)          # (2, Hid) f32
        prep["layers"].append({
            "wqkv": wqkv, "bqkv": bqkv,
            "wd": p["wd"].astype(bf16),
            "w1": p["w1"].astype(bf16),
            "w2": p["w2"].astype(bf16),
            "vecs_d": vecs_d, "vecs_h": vecs_h,
        })
    return prep


# --------------------------------------------------------------------------
# Pure-JAX reference (same prepared params, same bf16 cast points)
# --------------------------------------------------------------------------
def reference_forward(prep, token_ids, seg_ids, mask, n_heads, prune_emb):
    f32, bf16 = jnp.float32, jnp.bfloat16
    B, S = token_ids.shape
    D = prep["tok_emb"].shape[1]
    Dh = D // n_heads

    tok = jnp.take(prep["tok_emb"], token_ids, axis=0)
    pos = prep["pos_emb"][:S][None, :, :]
    seg = jnp.take(prep["seg_emb"], seg_ids, axis=0)
    x = _ref_layernorm((tok + pos + seg).astype(f32), prep["emb_gamma"], prep["emb_beta"])
    if prune_emb:
        x = x * prep["ib_emb_gate"]
    x = x.astype(bf16)

    neg = 10000.0 * (1.0 - mask.astype(f32))[:, None, None, :]   # (B,1,1,S)
    for lp in prep["layers"]:
        qkv = jnp.dot(x, lp["wqkv"], preferred_element_type=f32) + lp["bqkv"]
        qkv = qkv.astype(bf16)
        q, k, v = qkv[..., :D], qkv[..., D:2 * D], qkv[..., 2 * D:]

        def split(t):
            return t.reshape(B, S, n_heads, Dh).transpose(0, 2, 1, 3)
        qh, kh, vh = split(q), split(k), split(v)
        s = jnp.einsum("bhqd,bhkd->bhqk", qh, kh, preferred_element_type=f32)
        s = s - neg
        s = s - jnp.max(s, axis=-1, keepdims=True)
        p = jnp.exp(s)
        p = p / jnp.sum(p, axis=-1, keepdims=True)
        ctx = jnp.einsum("bhqk,bhkd->bqhd", p.astype(bf16), vh, preferred_element_type=f32)
        attn = ctx.reshape(B, S, D)                                # f32

        attn = attn * lp["vecs_d"][_VD_GATE_ATTN]
        h1 = jnp.dot(attn.astype(bf16), lp["wd"],
                     preferred_element_type=f32) + lp["vecs_d"][_VD_BD]
        x1 = _ref_layernorm(x.astype(f32) + h1,
                            lp["vecs_d"][_VD_G1], lp["vecs_d"][_VD_BE1])

        y = x1 * lp["vecs_d"][_VD_GATE_IB1]
        y = jnp.dot(y.astype(bf16), lp["w1"],
                    preferred_element_type=f32) + lp["vecs_h"][_VH_B1F]
        y = _gelu(y)
        y = y * lp["vecs_h"][_VH_GATE_IB2]
        y = jnp.dot(y.astype(bf16), lp["w2"],
                    preferred_element_type=f32) + lp["vecs_d"][_VD_B2F]
        x2 = _ref_layernorm(x1 + y, lp["vecs_d"][_VD_G2], lp["vecs_d"][_VD_BE2])
        x = (x2 * lp["vecs_d"][_VD_GATE_OUT]).astype(bf16)
    return x


# --------------------------------------------------------------------------
# Deterministic parameter initialization (PyTorch-style layout, f32)
# --------------------------------------------------------------------------
def init_params(key, vocab, n_segments, D, Hid, n_layers):
    def nrm(k, shape, scale=0.02):
        return (scale * jax.random.normal(k, shape)).astype(jnp.float32)

    keys = iter(jax.random.split(key, 16 + 16 * n_layers))
    params = {
        "tok_emb": nrm(next(keys), (vocab, D)),
        "pos_emb": nrm(next(keys), (512, D)),
        "seg_emb": nrm(next(keys), (n_segments, D)),
        "emb_gamma": jnp.ones((1, D), jnp.float32),
        "emb_beta": jnp.zeros((1, D), jnp.float32),
        "ib_emb_gate": (1.0 + 0.1 * jax.random.normal(next(keys), (1, D))).astype(jnp.float32),
        "layers": [],
    }
    for _ in range(n_layers):
        lp = {
            "wq": nrm(next(keys), (D, D)), "bq": jnp.zeros((1, D), jnp.float32),
            "wk": nrm(next(keys), (D, D)), "bk": jnp.zeros((1, D), jnp.float32),
            "wv": nrm(next(keys), (D, D)), "bv": jnp.zeros((1, D), jnp.float32),
            "gate_attn": (1.0 + 0.1 * jax.random.normal(next(keys), (1, D))).astype(jnp.float32),
            "wd": nrm(next(keys), (D, D)), "bd": jnp.zeros((1, D), jnp.float32),
            "g1": jnp.ones((1, D), jnp.float32), "be1": jnp.zeros((1, D), jnp.float32),
            "gate_ib1": (1.0 + 0.1 * jax.random.normal(next(keys), (1, D))).astype(jnp.float32),
            "w1": nrm(next(keys), (D, Hid)), "b1f": jnp.zeros((1, Hid), jnp.float32),
            "gate_ib2": (1.0 + 0.1 * jax.random.normal(next(keys), (1, Hid))).astype(jnp.float32),
            "w2": nrm(next(keys), (Hid, D)), "b2f": jnp.zeros((1, D), jnp.float32),
            "g2": jnp.ones((1, D), jnp.float32), "be2": jnp.zeros((1, D), jnp.float32),
            "gate_out": (1.0 + 0.1 * jax.random.normal(next(keys), (1, D))).astype(jnp.float32),
        }
        params["layers"].append(lp)
    return params


# --------------------------------------------------------------------------
if __name__ == "__main__":
    B, S, D, H, Hid = 2, 8, 32, 4, 64
    vocab, n_segments, n_layers = 100, 2, 2

    key = jax.random.PRNGKey(0)
    k_params, k_tok, k_seg = jax.random.split(key, 3)

    params = init_params(k_params, vocab, n_segments, D, Hid, n_layers)
    prep = prepare_params(params, n_heads=H)

    token_ids = jax.random.randint(k_tok, (B, S), 0, vocab, dtype=jnp.int32)
    seg_ids = jax.random.randint(k_seg, (B, S), 0, n_segments, dtype=jnp.int32)
    # attention mask: first sequence fully valid, second has last 3 positions padded
    lengths = jnp.array([S, S - 3], dtype=jnp.int32)
    mask = (jnp.arange(S)[None, :] < lengths[:, None]).astype(jnp.float32)

    out = bottled_bert_forward(prep, token_ids, seg_ids, mask,
                               n_heads=H, prune_emb=True)
    out = jax.block_until_ready(out)

    ref = reference_forward(prep, token_ids, seg_ids, mask,
                            n_heads=H, prune_emb=True)
    assert out.shape == (B, S, D)
    err = jnp.max(jnp.abs(out.astype(jnp.float32) - ref.astype(jnp.float32)))
    # bf16 activations + approx EUP reciprocal in the kernel vs exact divide in
    # the reference -> allow a couple of bf16 ULPs of slack.
    assert err < 2e-2, f"Pallas output mismatch vs reference (max abs err {err})"

    print("KERNEL_OK")
</pallas_src>

<mosaic_0001>
module attributes {stable_mosaic.version = 11 : i64} {
  func.func @qkv_proj_kernel(%arg0: i32, %arg1: i32, %arg2: memref<1x8x32xbf16, #tpu.memory_space<vmem>>, %arg3: memref<32x96xbf16, #tpu.memory_space<vmem>>, %arg4: memref<1x96xf32, #tpu.memory_space<vmem>>, %arg5: memref<1x8x32xbf16, #tpu.memory_space<vmem>>, %arg6: memref<1x8x32xbf16, #tpu.memory_space<vmem>>, %arg7: memref<1x8x32xbf16, #tpu.memory_space<vmem>>) attributes {dimension_semantics = [#tpu.dimension_semantics<parallel>, #tpu.dimension_semantics<parallel>], iteration_bounds = array<i64: 2, 1>, scalar_prefetch = 0 : i64, scratch_operands = 0 : i64, tpu.core_type = #tpu.core_type<tc>, window_params = [{transform_indices = @transform_0, window_bounds = array<i64: 1, 8, 32>}, {pipeline_mode = #tpu.pipeline_mode<synchronous>, transform_indices = @transform_1, window_bounds = array<i64: 32, 96>}, {pipeline_mode = #tpu.pipeline_mode<synchronous>, transform_indices = @transform_2, window_bounds = array<i64: 1, 96>}, {transform_indices = @transform_3, window_bounds = array<i64: 1, 8, 32>}, {transform_indices = @transform_4, window_bounds = array<i64: 1, 8, 32>}, {transform_indices = @transform_5, window_bounds = array<i64: 1, 8, 32>}]} {
    %c0 = arith.constant 0 : index
    %c0_0 = arith.constant 0 : index
    %c0_1 = arith.constant 0 : index
    %0 = vector.load %arg2[%c0, %c0_0, %c0_1] : memref<1x8x32xbf16, #tpu.memory_space<vmem>>, vector<1x8x32xbf16>
    %1 = vector.shape_cast %0 : vector<1x8x32xbf16> to vector<8x32xbf16>
    %c0_2 = arith.constant 0 : index
    %c0_3 = arith.constant 0 : index
    %2 = vector.load %arg3[%c0_2, %c0_3] : memref<32x96xbf16, #tpu.memory_space<vmem>>, vector<32x96xbf16>
    %cst = arith.constant dense<0.000000e+00> : vector<8x96xf32>
    %3 = tpu.matmul %1, %2, %cst {dimension_numbers = #tpu.dot_dimension_numbers<[1], [0], [0], [1], [0, 0, 1, 1], [], []>} : vector<8x32xbf16>, vector<32x96xbf16>, vector<8x96xf32> -> vector<8x96xf32>
    %c0_4 = arith.constant 0 : index
    %c0_5 = arith.constant 0 : index
    %4 = vector.load %arg4[%c0_4, %c0_5] : memref<1x96xf32, #tpu.memory_space<vmem>>, vector<1x96xf32>
    %5 = vector.broadcast %4 : vector<1x96xf32> to vector<8x96xf32>
    %6 = arith.addf %3, %5 : vector<8x96xf32>
    %7 = vector.extract_strided_slice %6 {offsets = [0, 0], sizes = [8, 32], strides = [1, 1]} : vector<8x96xf32> to vector<8x32xf32>
    %8 = arith.truncf %7 : vector<8x32xf32> to vector<8x32xbf16>
    %c0_6 = arith.constant 0 : index
    %c0_7 = arith.constant 0 : index
    %c0_8 = arith.constant 0 : index
    %9 = vector.load %arg5[%c0_6, %c0_7, %c0_8] : memref<1x8x32xbf16, #tpu.memory_space<vmem>>, vector<1x8x32xbf16>
    %10 = vector.shape_cast %9 : vector<1x8x32xbf16> to vector<8x32xbf16>
    %11 = vector.shape_cast %8 : vector<8x32xbf16> to vector<1x8x32xbf16>
    tpu.vector_store %arg5[%c0_6, %c0_7, %c0_8], %11 {strides = array<i32>} : memref<1x8x32xbf16, #tpu.memory_space<vmem>>, vector<1x8x32xbf16>,
    %12 = vector.extract_strided_slice %6 {offsets = [0, 32], sizes = [8, 32], strides = [1, 1]} : vector<8x96xf32> to vector<8x32xf32>
    %13 = arith.truncf %12 : vector<8x32xf32> to vector<8x32xbf16>
    %c0_9 = arith.constant 0 : index
    %c0_10 = arith.constant 0 : index
    %c0_11 = arith.constant 0 : index
    %14 = vector.load %arg6[%c0_9, %c0_10, %c0_11] : memref<1x8x32xbf16, #tpu.memory_space<vmem>>, vector<1x8x32xbf16>
    %15 = vector.shape_cast %14 : vector<1x8x32xbf16> to vector<8x32xbf16>
    %16 = vector.shape_cast %13 : vector<8x32xbf16> to vector<1x8x32xbf16>
    tpu.vector_store %arg6[%c0_9, %c0_10, %c0_11], %16 {strides = array<i32>} : memref<1x8x32xbf16, #tpu.memory_space<vmem>>, vector<1x8x32xbf16>,
    %17 = vector.extract_strided_slice %6 {offsets = [0, 64], sizes = [8, 32], strides = [1, 1]} : vector<8x96xf32> to vector<8x32xf32>
    %18 = arith.truncf %17 : vector<8x32xf32> to vector<8x32xbf16>
    %c0_12 = arith.constant 0 : index
    %c0_13 = arith.constant 0 : index
    %c0_14 = arith.constant 0 : index
    %19 = vector.load %arg7[%c0_12, %c0_13, %c0_14] : memref<1x8x32xbf16, #tpu.memory_space<vmem>>, vector<1x8x32xbf16>
    %20 = vector.shape_cast %19 : vector<1x8x32xbf16> to vector<8x32xbf16>
    %21 = vector.shape_cast %18 : vector<8x32xbf16> to vector<1x8x32xbf16>
    tpu.vector_store %arg7[%c0_12, %c0_13, %c0_14], %21 {strides = array<i32>} : memref<1x8x32xbf16, #tpu.memory_space<vmem>>, vector<1x8x32xbf16>,
    return
  }
  func.func @transform_0(%arg0: i32, %arg1: i32) -> (i32, i32, i32) {
    %c0_i32 = arith.constant 0 : i32
    %c0_i32_0 = arith.constant 0 : i32
    return %arg0, %arg1, %c0_i32 : i32, i32, i32
  }
  func.func @transform_1(%arg0: i32, %arg1: i32) -> (i32, i32) {
    %c0_i32 = arith.constant 0 : i32
    %c0_i32_0 = arith.constant 0 : i32
    %c0_i32_1 = arith.constant 0 : i32
    return %c0_i32, %c0_i32_0 : i32, i32
  }
  func.func @transform_2(%arg0: i32, %arg1: i32) -> (i32, i32) {
    %c0_i32 = arith.constant 0 : i32
    %c0_i32_0 = arith.constant 0 : i32
    %c0_i32_1 = arith.constant 0 : i32
    return %c0_i32, %c0_i32_0 : i32, i32
  }
  func.func @transform_3(%arg0: i32, %arg1: i32) -> (i32, i32, i32) {
    %c0_i32 = arith.constant 0 : i32
    %c0_i32_0 = arith.constant 0 : i32
    return %arg0, %arg1, %c0_i32 : i32, i32, i32
  }
  func.func @transform_4(%arg0: i32, %arg1: i32) -> (i32, i32, i32) {
    %c0_i32 = arith.constant 0 : i32
    %c0_i32_0 = arith.constant 0 : i32
    return %arg0, %arg1, %c0_i32 : i32, i32, i32
  }
  func.func @transform_5(%arg0: i32, %arg1: i32) -> (i32, i32, i32) {
    %c0_i32 = arith.constant 0 : i32
    %c0_i32_0 = arith.constant 0 : i32
    return %arg0, %arg1, %c0_i32 : i32, i32, i32
  }
}

</mosaic_0001>

<bundles_post_ra>
// kernel: tpu_custom_call.1
= control target key start
LH: loop header
LB: loop body
LE: loop exit
PB: predicated region body
PF: predicated region fallthrough
CT: control target
= control target key end

     0   :  { %s1119_s0 = inlined_call_operand.hbm [shape: bf16[2,8,32], index: 0, kind: input, shape index: {}]   ;;  %s1120_s1 = inlined_call_operand.hbm [shape: bf16[32,96], index: 1, kind: input, shape index: {}]   ;;  %s1121_s2 = inlined_call_operand.vmem [shape: f32[1,96], index: 2, kind: input, shape index: {}]   ;;  %s1122_s3 = inlined_call_operand.hbm [shape: bf16[2,8,32], index: 3, kind: output, shape index: {0}]   ;;  %s1123_s4 = inlined_call_operand.hbm [shape: bf16[2,8,32], index: 4, kind: output, shape index: {1}]   ;;  %s1124_s5 = inlined_call_operand.hbm [shape: bf16[2,8,32], index: 5, kind: output, shape index: {2}]  }
   0x1   :  { %1126 = sst [smem:[#allocation15_spill]] %s1119_s0 }
   0x2   :  { %11 = vsyncpa [#allocation3], 0 }
   0x3   :  { %13 = vsyncpa [#allocation3 + $0x1], 0 }
   0x4   :  { %14 = vsyncpa [#allocation6], 0 }
   0x5   :  { %15 = vsyncpa [#allocation4], 0 }
   0x6   :  { %17 = vsyncpa [#allocation4 + $0x1], 0 }
   0x7   :  { %18 = vsyncpa [#allocation9], 0 }
   0x8   :  { %20 = vsyncpa [#allocation9 + $0x1], 0  ;;  %s924_s18 = smov 0   ;;  %s926_s19 = smov 0  }
   0x9   :  { %s928_s20 = smov 0   ;;  %s930_s21 = smov 0  }
   0xa   :  { %s932_s22 = smov 0   ;;  %s934_s23 = smov 0  }
   0xb LB: > { %s955_s24 = sadd.s32 4294967295, %s887_s23   ;;  %p563_p0 = scmp.ge.s32.totalorder %s887_s23, 1  ;;  %s887_s23 = sphi %s934_s23, %s26_s23   ;;  %s883_s22 = sphi %s932_s22, %s1138_s22   ;;  %s879_s21 = sphi %s930_s21, %s1137_s21   ;;  %s875_s20 = sphi %s928_s20, %s1136_s20   ;;  %s871_s19 = sphi %s926_s19, %s1135_s19   ;;  %s867_s18 = sphi %s924_s18, %s1134_s18  }
   0xc   : > { %p61_p1 = scmp.eq.s32.totalorder %s955_s24, 0  ;;  %p197_p2 = scmp.lt.s32.totalorder %s887_s23, 3 }
   0xd   : > { %s208_s27 = sshll.u32 %s1120_s1, 4  ;;  %s889_s29 = smov [#allocation5]   ;;  %s209_s27 = int_to_ptr.hbm [resolvable:$true] %s208_s27 }
   0xe   : > { %p963_p3 = pnand %p563_p0, %p197_p2  ;;  %s210_s30 = sshll.u32 %s889_s29, 4  ;;  %s211_s30 = int_to_ptr.vmem [resolvable:$true] %s210_s30 }
   0xf   : > { %p565_p6 = scmp.ge.s32.totalorder %s887_s23, 2  ;;  %s890_s6 = smov 64  }
  0x10   : > { %p605_p4 = pneg %p963_p3  ;;  %s891_s7 = smov 4  }
  0x11   : > { %s1125_s8 = sadd.s32 4294967294, %s887_s23   ;;  %s38_s9 = sadd.s32 1, %s883_s22 }
  0x12   : > { %p606_p5 = pnand %p605_p4, %p61_p1  ;;  %s47_s10 = sadd.s32 1, %s875_s20 }
  0x13   : > { %p40_p7 = scmp.ge.s32.totalorder %s38_s9, 2  ;;  %p54_p8 = scmp.ne.s32.totalorder %s875_s20, %s871_s19 }
  0x14   : > { %608 = dma.hbm_to_vmem [thread:$0]  (!%p606_p5), %s209_s27, 256, %s211_s30, [#allocation6], %s890_s6, %s890_s6, %s891_s7  }
  0x15   : > { %p55_p9 = scmp.eq.s32.totalorder %s887_s23, 0  ;;  %p60_p10 = scmp.ne.s32.totalorder %s871_s19, %s867_s18 }
  0x16   : > { %s1140_s9 = smov (%p40_p7, %s38_s9), 0  ;;  %p128_p13 = scmp.eq.s32.totalorder %s955_s24, 1 }
  0x17   : > { %p982_p11 = por %p55_p9, %p54_p8  ;;  %p988_p12 = por %p61_p1, %p60_p10 }
  0x18   : > { %s42_s13 = ssub.s32 %s883_s22, %s1140_s9  ;;  %p134_p2 = scmp.eq.s32.totalorder %s1125_s8, 1 }
  0x19   : > { %p45_p0 = scmp.eq.s32.totalorder %s42_s13, 0  ;;  %p997_p4 = por %p128_p13, %p54_p8 }
  0x1a   : > { %p624_p5 = scmp.lt.s32.totalorder %s887_s23, 2  ;;  %p1005_p7 = por %p134_p2, %p60_p10 }
  0x1b   : > { %s1003_s15 = scalar_select %p45_p0, %s875_s20, %s47_s10  }
  0x1c   : > { %s227_s17 = sand.u32 1, %s875_s20   ;;  %s567_s26 = sshll.u32 %s883_s22, 2 }
  0x1d   : > { %s566_s25 = sshll.u32 %s227_s17, 2  ;;  %s1132_s0 = sld [smem:[#allocation15_spill]] }
  0x1e   : > { %s231_s6 = scalar_lea.vmem [#allocation2], %s566_s25  ;;  %p610_p8 = pnand %p624_p5, %p982_p11 }
  0x1f   : > { %s240_s7 = sshll.u32 %s231_s6, 4  ;;  %s228_s10 = scalar_lea.sflag [#allocation3], %s227_s17  ;;  %s241_s7 = int_to_ptr.vmem [resolvable:$true] %s240_s7 }
  0x20   : > { %s1019_s8 = sand.u32 (!%p963_p3), 1, %s871_s19  }
  0x21   : > { %249 = sbr.rel (%p963_p3) target bundleno = 310 (0x136), region = 32  ;;  %s1022_s27 = sshll.u32 (!%p963_p3), %s1019_s8, 2 }
  0x22   : > { %s252_s25 = scalar_lea.sflag (!%p963_p3), [#allocation3], %s1019_s8 }
  0x23   : > { %s236_s30 = scalar_lea.hbm %s1132_s0, %s567_s26  ;;  %s255_s26 = scalar_lea.vmem (!%p963_p3), [#allocation2], %s1022_s27 }
  0x24   : > { %s238_s13 = sshll.u32 %s236_s30, 4  ;;  %s239_s13 = int_to_ptr.hbm [resolvable:$true] %s238_s13 }
  0x25   : > { %612 = dma.hbm_to_vmem [thread:$0]  (!%p610_p8), %s239_s13, 64, %s241_s7, %s228_s10  }
  0x26   : > { %850 = dma.done.wait (%p988_p12), %s252_s25, 64  }
  0x27   : > { %852 = vsyncadd (%p988_p12), %s252_s25, 4294967232 }
  0x28   : > { %854 = dma.done.wait (%p61_p1), [#allocation6], 256  }
  0x29   : > { %856 = vsyncadd (%p61_p1), [#allocation6], 4294967040  ;;  %v592_v0 = vld [vmem:[#allocation5 + $0x8] sm:$0xff]  ;;  %v591_v1 = vld [vmem:[#allocation5] sm:$0xff]  ;;  %vm320_vm0 = vcmask 261120   ;;  %s1038_s12 = sshll.u32 %s879_s21, 2 }
  0x2a   : > { %330 = vmatpush.bf16.msra.mxu0 %v592_v0  ;;  %v299_v2 = vld [vmem:[%s255_s26] sm:$0xf]  ;;  %s371_s30 = scalar_lea.hbm %s1122_s3, %s1038_s12  ;;  %vm338_vm1 = vcmask 257024   ;;  %s283_s6 = scalar_lea.vmem [#allocation7], %s1022_s27 }
  0x2b   : > { %v680_v3 = vld [vmem:[%s1121_s2] ss:$0 sm:$0xff]  ;;  %s373_s7 = sshll.u32 %s283_s6, 4  ;;  %s375_s13 = sshll.u32 %s371_s30, 4  ;;  %s374_s7 = int_to_ptr.vmem [resolvable:$true] %s373_s7  ;;  %s376_s13 = int_to_ptr.hbm [resolvable:$true] %s375_s13 }
  0x2c   : > { %s892_s10 = smov 96   ;;  %s350_s21 = scalar_lea.sflag [#allocation4], %s1019_s8 }
  0x2d   : > { %s755_s25 = sshra.s32 %s376_s13, 4  ;;  %s761_s17 = scalar_lea.hbm %s1122_s3, 8  ;;  %s756_s25 = int_to_ptr.hbm [resolvable:$true] %s755_s25 }
  0x2e   : > { %331 = vmatpush.bf16.msra.mxu0 %v591_v1  ;;  %s757_s26 = scalar_lea.hbm %s756_s25, 4  ;;  %p762_p10 = scmp.lt.s32.totalorder %s756_s25, %s1122_s3 }
  0x2f   : > { %p758_p1 = scmp.ne.s32.totalorder %s756_s25, %s757_s26  ;;  %p763_p11 = scmp.lt.s32.totalorder %s761_s17, %s757_s26 }
  0x31   : > { %582 = vmatmul.msk.bf16.vlgmr.msra.gmra.mxu0 %vm320_vm0, %v299_v2  ;;  %p759_p3 = pnand %p758_p1, %p997_p4  ;;  %p764_p12 = por %p763_p11, %p762_p10 }
  0x33   : > { %p760_p9 = pneg %p759_p3 }
  0x35   : > { %p765_p13 = pnand %p764_p12, %p760_p9 }
  0xae   : > { %v333_v4 = vpop.f32.mrf.mxu0 }
  0xaf   : > { %v334_v5 = vadd.f32 %v680_v3, %v333_v4 }
  0xb1   : > { %v337_v6 = vpack.c.bf16 %v334_v5, %v334_v5 }
  0xb3   : > { %341 = vrot.lane.b32.xlu0 %v337_v6, %s892_s10  ;;  %339 = vst.msk [vmem:[%s283_s6] sm:$0xf] %vm338_vm1, %v337_v6 }
  0xb4   : > { %768 = shalt.err (!%p765_p13)
}
  0xb5   : > { %599 = dma.vmem_to_hbm [thread:$0]  (%p997_p4), %s374_s7, 64, %s376_s13, %s350_s21  }
  0xb6   : > { %v335_v7 = vpop.f32.mrf.mxu0  ;;  %s893_s8 = smov 64   ;;  %s386_s28 = scalar_lea.hbm %s1123_s4, %s1038_s12 }
  0xb7   : > { %s354_s25 = sand.u32 1, %s955_s24   ;;  %s290_s26 = scalar_lea.vmem [#allocation8], %s1022_s27 }
  0xb8   : > { %s388_s11 = sshll.u32 %s290_s26, 4  ;;  %s390_s17 = sshll.u32 %s386_s28, 4  ;;  %s389_s11 = int_to_ptr.vmem [resolvable:$true] %s388_s11  ;;  %s391_s17 = int_to_ptr.hbm [resolvable:$true] %s390_s17 }
  0xb9   : > { %s401_s7 = scalar_lea.hbm %s1124_s5, %s1038_s12  ;;  %s1068_s13 = scalar_lea.sflag [#allocation9], %s354_s25 }
  0xba   : > { %s783_s21 = sshra.s32 %s391_s17, 4  ;;  %s789_s10 = scalar_lea.hbm %s1123_s4, 8  ;;  %s784_s21 = int_to_ptr.hbm [resolvable:$true] %s783_s21 }
  0xbb   : > { %345 = vrot.lane.b32.xlu0 %v337_v6, %s893_s8  ;;  %s785_s8 = scalar_lea.hbm %s784_s21, 4  ;;  %p790_p8 = scmp.lt.s32.totalorder %s784_s21, %s1123_s4 }
  0xbc   : > { %p786_p0 = scmp.ne.s32.totalorder %s784_s21, %s785_s8  ;;  %p791_p1 = scmp.lt.s32.totalorder %s789_s10, %s785_s8 }
  0xbe   : > { %p787_p2 = pnand %p786_p0, %p997_p4  ;;  %p792_p3 = por %p791_p1, %p790_p8 }
  0xc0   : > { %p788_p5 = pneg %p787_p2 }
  0xc2   : > { %p793_p9 = pnand %p792_p3, %p788_p5 }
 0x125   : > { %v342_v8 = vpop.permute.xlu0 %341 }
 0x126   : > { %344 = vst.msk [vmem:[%s290_s26] sm:$0xf] %vm338_vm1, %v342_v8 }
 0x127   : > { %796 = shalt.err (!%p793_p9)
}
 0x128   : > { %600 = dma.vmem_to_hbm [thread:$0]  (%p997_p4), %s389_s11, 64, %s391_s17, %s1068_s13  }
 0x129   : > { %s297_s12 = scalar_lea.vmem [#allocation10], %s1022_s27  ;;  %s405_s26 = sshll.u32 %s401_s7, 4  ;;  %s406_s26 = int_to_ptr.hbm [resolvable:$true] %s405_s26 }
 0x12a   : > { %s403_s25 = sshll.u32 %s297_s12, 4  ;;  %s811_s0 = sshra.s32 %s406_s26, 4  ;;  %s404_s25 = int_to_ptr.vmem [resolvable:$true] %s403_s25  ;;  %s812_s0 = int_to_ptr.hbm [resolvable:$true] %s811_s0 }
 0x12b   : > { %s813_s29 = scalar_lea.hbm %s812_s0, 4  ;;  %s817_s8 = scalar_lea.hbm %s1124_s5, 8 }
 0x12c   : > { %p814_p10 = scmp.ne.s32.totalorder %s812_s0, %s813_s29  ;;  %p818_p13 = scmp.lt.s32.totalorder %s812_s0, %s1124_s5 }
 0x12d   : > { %v346_v9 = vpop.permute.xlu0 %345  ;;  %p819_p0 = scmp.lt.s32.totalorder %s817_s8, %s813_s29 }
 0x12e   : > { %348 = vst.msk [vmem:[%s297_s12] sm:$0xf] %vm338_vm1, %v346_v9  ;;  %p815_p11 = pnand %p814_p10, %p997_p4 }
 0x12f   : > { %p820_p2 = por %p819_p0, %p818_p13 }
 0x130   : > { %p816_p12 = pneg %p815_p11 }
 0x132   : > { %p821_p5 = pnand %p820_p2, %p816_p12 }
 0x134   : > { %824 = shalt.err (!%p821_p5)
}
 0x135   : > { %601 = dma.vmem_to_hbm [thread:$0]  (%p997_p4), %s404_s25, 64, %s406_s26, %s1068_s13  }
 0x136 PF: > { %s417_s17 = sand.u32 1, %s867_s18   ;;  %p614_p8 = pnand %p565_p6, %p1005_p7 }
 0x137   : > { %s418_s7 = scalar_lea.sflag [#allocation4], %s417_s17 }
 0x138   : > { %p615_p1 = pneg %p614_p8 }
 0x13a   : > { %858 = dma.done.wait (%p615_p1), %s418_s7, 64  }
 0x13b   : > { %860 = vsyncadd (%p615_p1), %s418_s7, 4294967232  ;;  %s1133_s24 = sadd.s32 4294967294, %s887_s23  }
 0x13c   : > { %s427_s6 = sand.u32 1, %s1133_s24  }
 0x13d   : > { %s428_s10 = scalar_lea.sflag [#allocation9], %s427_s6 }
 0x13e   : > { %862 = dma.done.wait (%p615_p1), %s428_s10, 128  }
 0x13f   : > { %864 = vsyncadd (%p615_p1), %s428_s10, 4294967168  ;;  %s26_s23 = sadd.s32 1, %s887_s23   ;;  %s1134_s18 = smov %s871_s19 }
 0x140   : > { %p23_p4 = scmp.ge.s32.totalorder %s26_s23, 4   ;;  %s1135_s19 = smov %s875_s20 }
 0x141   : > { %s1136_s20 = smov %s1003_s15  ;;  %s1137_s21 = smov %s883_s22 }
 0x142   : > { %s1138_s22 = smov %s1140_s9  ;;  %25 = sbr.rel (!%p23_p4) target bundleno = 11 (0xb), region = 113 }
 0x147   :  { %444 = vsyncpa [#allocation3], 1 }
 0x148   :  { %446 = vsyncpa [#allocation3 + $0x1], 1 }
 0x149   :  { %447 = vsyncpa [#allocation6], 1 }
 0x14a   :  { %448 = vsyncpa [#allocation4], 1 }
 0x14b   :  { %450 = vsyncpa [#allocation4 + $0x1], 1 }
 0x14c   :  { %451 = vsyncpa [#allocation9], 1 }
 0x14d   :  { %453 = vsyncpa [#allocation9 + $0x1], 1 }

</bundles_post_ra>
